<compile_context>
chip_gen: v5e
topology: v5e:2x2
jax: 0.10.0
libtpu: 0.0.40
codegen_flags: <defaults>
</compile_context>

<pallas_src>
import jax
import jax.numpy as jnp
from jax.experimental import pallas as pl
from jax.experimental.pallas import tpu as pltpu


def _make_kernel(W, HW, L, cin_aug, cm, o2):
    """Kernel on channels-major activations (C, L) with L = N*H*W on lanes."""

    def kernel(x_ref, ws_ref, wo_ref, o_ref):
        f32 = jnp.float32
        x = x_ref[...]                                   # (Cin+1, L)

        # Boundary masks, built once from a single (1, L) lane iota and
        # broadcast (sublane broadcast is cheap). `loc` is the flattened
        # index inside one image, `col` the column inside one row, so the
        # masks also stop rolls from leaking across image boundaries.
        lane = jax.lax.broadcasted_iota(jnp.int32, (1, L), 1)
        loc = lane % HW
        col = lane % W
        m_up = loc >= W               # row h-1 exists
        m_dn = loc < HW - W           # row h+1 exists
        m_lf = col >= 1               # col w-1 exists
        m_rt = col < W - 1            # col w+1 exists

        # ---- stage 1: 1x1 conv + ReLU (bias folded into MXU via ones row) --
        y = jnp.maximum(
            jnp.dot(ws_ref[:, 0:cin_aug], x, preferred_element_type=f32), 0.0)

        # ---- stage 2: (3,1) conv over H, pad (1,0), + ReLU ----------------
        y_up = jnp.where(m_up, pltpu.roll(y, W, axis=1), 0.0)       # y[h-1]
        y_dn = jnp.where(m_dn, pltpu.roll(y, L - W, axis=1), 0.0)   # y[h+1]
        z = (jnp.dot(ws_ref[:, o2 + 0 * cm:o2 + 1 * cm], y_up,
                     preferred_element_type=f32)
             + jnp.dot(ws_ref[:, o2 + 1 * cm:o2 + 2 * cm], y,
                       preferred_element_type=f32)
             + jnp.dot(ws_ref[:, o2 + 2 * cm:o2 + 3 * cm], y_dn,
                       preferred_element_type=f32)
             + ws_ref[:, o2 + 6 * cm:o2 + 6 * cm + 1])              # + b2
        z = jnp.maximum(z, 0.0)

        # ---- stage 3: (1,3) conv over W, pad (0,1), + ReLU ----------------
        z_lf = jnp.where(m_lf, pltpu.roll(z, 1, axis=1), 0.0)       # z[w-1]
        z_rt = jnp.where(m_rt, pltpu.roll(z, L - 1, axis=1), 0.0)   # z[w+1]
        u = (jnp.dot(ws_ref[:, o2 + 3 * cm:o2 + 4 * cm], z_lf,
                     preferred_element_type=f32)
             + jnp.dot(ws_ref[:, o2 + 4 * cm:o2 + 5 * cm], z,
                       preferred_element_type=f32)
             + jnp.dot(ws_ref[:, o2 + 5 * cm:o2 + 6 * cm], z_rt,
                       preferred_element_type=f32)
             + ws_ref[:, o2 + 6 * cm + 1:o2 + 6 * cm + 2])          # + b3
        u = jnp.maximum(u, 0.0)

        # ---- stage 4: final 1x1 conv (no activation) ----------------------
        out = (jnp.dot(wo_ref[:, 0:cm], u, preferred_element_type=f32)
               + wo_ref[:, cm:cm + 1])                              # + b4
        o_ref[...] = out.astype(o_ref.dtype)

    return kernel


def pack_params(params):
    """One-time (init) weight prep: pack 8 PyTorch tensors into 2 MXU slabs."""
    W1, b1, W2, b2, W3, b3, W4, b4 = params
    cm, cin = W1.shape[0], W1.shape[1]
    cout = W4.shape[0]
    f32 = jnp.float32

    # stage-1 weight with its bias folded in as an extra input column.
    w1_aug = jnp.concatenate(
        [W1.reshape(cm, cin).astype(f32), b1.reshape(cm, 1).astype(f32)],
        axis=1)                                          # (cm, cin+1)
    o2 = ((cin + 1 + 7) // 8) * 8                        # 8-aligned block start
    blocks = [w1_aug]
    if o2 > cin + 1:
        blocks.append(jnp.zeros((cm, o2 - (cin + 1)), f32))
    blocks += [
        W2[:, :, 0, 0].astype(f32),   # (3,1) tap h-1
        W2[:, :, 1, 0].astype(f32),   # (3,1) tap h
        W2[:, :, 2, 0].astype(f32),   # (3,1) tap h+1
        W3[:, :, 0, 0].astype(f32),   # (1,3) tap w-1
        W3[:, :, 0, 1].astype(f32),   # (1,3) tap w
        W3[:, :, 0, 2].astype(f32),   # (1,3) tap w+1
        b2.reshape(cm, 1).astype(f32),
        b3.reshape(cm, 1).astype(f32),
    ]
    ws = jnp.concatenate(blocks, axis=1)                 # (cm, o2 + 6*cm + 2)
    wo = jnp.concatenate(
        [W4.reshape(cout, cm).astype(f32), b4.reshape(cout, 1).astype(f32)],
        axis=1)                                          # (cout, cm + 1)
    return ws, wo


@jax.jit
def small_basic_block_forward(x_nchw, ws, wo):
    """x_nchw: (N, Cin, H, W) f32; ws/wo from pack_params. -> (N, Cout, H, W)."""
    N, cin, H, Wd = x_nchw.shape
    cm = ws.shape[0]
    cout = wo.shape[0]
    HW = H * Wd
    L = N * HW
    o2 = ((cin + 1 + 7) // 8) * 8

    # channels-major with batch folded onto lanes, plus a ones row so the
    # stage-1 bias rides the MXU contraction for free (Cin+1 <= 8 sublanes).
    x_cl = jnp.transpose(x_nchw.reshape(N, cin, HW), (1, 0, 2)).reshape(cin, L)
    x_aug = jnp.concatenate([x_cl, jnp.ones((1, L), x_cl.dtype)], axis=0)

    out = pl.pallas_call(
        _make_kernel(Wd, HW, L, cin + 1, cm, o2),
        out_shape=jax.ShapeDtypeStruct((cout, L), jnp.float32),
        grid_spec=pltpu.PrefetchScalarGridSpec(
            num_scalar_prefetch=0,
            grid=(1,),
            in_specs=[
                pl.BlockSpec(x_aug.shape, lambda i: (0, 0)),
                pl.BlockSpec(ws.shape, lambda i: (0, 0)),
                pl.BlockSpec(wo.shape, lambda i: (0, 0)),
            ],
            out_specs=pl.BlockSpec((cout, L), lambda i: (0, 0)),
        ),
        compiler_params=pltpu.CompilerParams(
            dimension_semantics=("arbitrary",)),
    )(x_aug, ws, wo)

    # (Cout, N*HW) -> (N, Cout, H, W); tiny layout ops fused under the jit.
    return jnp.transpose(out.reshape(cout, N, HW), (1, 0, 2)).reshape(
        N, cout, H, Wd)


def make_params(key, ch_in, ch_out):
    """Deterministic synthetic weights in PyTorch layout (OIHW / (C,))."""
    cm = ch_out // 4
    ks = jax.random.split(key, 8)
    s = 0.1
    W1 = jax.random.normal(ks[0], (cm, ch_in, 1, 1), jnp.float32) * s
    b1 = jax.random.normal(ks[1], (cm,), jnp.float32) * s
    W2 = jax.random.normal(ks[2], (cm, cm, 3, 1), jnp.float32) * s
    b2 = jax.random.normal(ks[3], (cm,), jnp.float32) * s
    W3 = jax.random.normal(ks[4], (cm, cm, 1, 3), jnp.float32) * s
    b3 = jax.random.normal(ks[5], (cm,), jnp.float32) * s
    W4 = jax.random.normal(ks[6], (ch_out, cm, 1, 1), jnp.float32) * s
    b4 = jax.random.normal(ks[7], (ch_out,), jnp.float32) * s
    return (W1, b1, W2, b2, W3, b3, W4, b4)


def _reference(x_nchw, params):
    """Pure-JAX reference using lax.conv_general_dilated (matches PyTorch)."""
    W1, b1, W2, b2, W3, b3, W4, b4 = params
    dn = ("NCHW", "OIHW", "NCHW")

    def conv(x, w, b, pad):
        y = jax.lax.conv_general_dilated(x, w, (1, 1), pad,
                                         dimension_numbers=dn)
        return y + b.reshape(1, -1, 1, 1)

    y = jax.nn.relu(conv(x_nchw, W1, b1, [(0, 0), (0, 0)]))
    y = jax.nn.relu(conv(y, W2, b2, [(1, 1), (0, 0)]))
    y = jax.nn.relu(conv(y, W3, b3, [(0, 0), (1, 1)]))
    return conv(y, W4, b4, [(0, 0), (0, 0)])


if __name__ == "__main__":
    N, CH_IN, CH_OUT, H, W = 2, 4, 32, 16, 16

    key = jax.random.PRNGKey(0)
    kx, kp = jax.random.split(key)
    x = jax.random.normal(kx, (N, CH_IN, H, W), jnp.float32)
    params = make_params(kp, CH_IN, CH_OUT)

    # one-time weight packing at init; the jitted forward reuses the slabs.
    ws, wo = pack_params(params)

    out = small_basic_block_forward(x, ws, wo)
    jax.block_until_ready(out)

    ref = _reference(x, params)
    assert out.shape == (N, CH_OUT, H, W)
    assert jnp.allclose(out, ref, atol=1e-4, rtol=1e-4), "mismatch vs reference"

    print("KERNEL_OK")
</pallas_src>

<mosaic_0001>
module attributes {stable_mosaic.version = 11 : i64} {
  func.func @kernel(%arg0: i32, %arg1: memref<5x512xf32, #tpu.memory_space<vmem>>, %arg2: memref<8x58xf32, #tpu.memory_space<vmem>>, %arg3: memref<32x9xf32, #tpu.memory_space<vmem>>, %arg4: memref<32x512xf32, #tpu.memory_space<vmem>>) attributes {dimension_semantics = [#tpu.dimension_semantics<arbitrary>], iteration_bounds = array<i64: 1>, scalar_prefetch = 0 : i64, scratch_operands = 0 : i64, tpu.core_type = #tpu.core_type<tc>, window_params = [{pipeline_mode = #tpu.pipeline_mode<synchronous>, transform_indices = @transform_0, window_bounds = array<i64: 5, 512>}, {pipeline_mode = #tpu.pipeline_mode<synchronous>, transform_indices = @transform_1, window_bounds = array<i64: 8, 58>}, {pipeline_mode = #tpu.pipeline_mode<synchronous>, transform_indices = @transform_2, window_bounds = array<i64: 32, 9>}, {pipeline_mode = #tpu.pipeline_mode<synchronous>, transform_indices = @transform_3, window_bounds = array<i64: 32, 512>}]} {
    %c0 = arith.constant 0 : index
    %c0_0 = arith.constant 0 : index
    %0 = vector.load %arg1[%c0, %c0_0] : memref<5x512xf32, #tpu.memory_space<vmem>>, vector<5x512xf32>
    %1 = tpu.iota {dimensions = array<i32: 1>} : vector<1x512xi32>
    %c256_i32 = arith.constant 256 : i32
    %c0_i32 = arith.constant 0 : i32
    %2 = arith.cmpi eq, %c256_i32, %c0_i32 : i32
    %c1_i32 = arith.constant 1 : i32
    %3 = arith.select %2, %c1_i32, %c256_i32 : i32
    %4 = vector.broadcast %3 : i32 to vector<1x512xi32>
    %5 = arith.remsi %1, %4 : vector<1x512xi32>
    %c0_i32_1 = arith.constant 0 : i32
    %6 = vector.broadcast %c0_i32_1 : i32 to vector<1x512xi32>
    %7 = arith.cmpi ne, %5, %6 : vector<1x512xi32>
    %c0_i32_2 = arith.constant 0 : i32
    %8 = vector.broadcast %c0_i32_2 : i32 to vector<1x512xi32>
    %9 = arith.cmpi slt, %5, %8 : vector<1x512xi32>
    %c0_i32_3 = arith.constant 0 : i32
    %10 = arith.cmpi slt, %3, %c0_i32_3 : i32
    %11 = vector.broadcast %10 : i1 to vector<1x512xi1>
    %12 = vector.broadcast %11 : vector<1x512xi1> to vector<1x512xi1>
    %13 = arith.xori %9, %12 : vector<1x512xi1>
    %14 = arith.andi %13, %7 : vector<1x512xi1>
    %15 = vector.broadcast %3 : i32 to vector<1x512xi32>
    %16 = arith.addi %5, %15 : vector<1x512xi32>
    %17 = arith.select %14, %16, %5 : vector<1x512xi1>, vector<1x512xi32>
    %c16_i32 = arith.constant 16 : i32
    %c0_i32_4 = arith.constant 0 : i32
    %18 = arith.cmpi eq, %c16_i32, %c0_i32_4 : i32
    %c1_i32_5 = arith.constant 1 : i32
    %19 = arith.select %18, %c1_i32_5, %c16_i32 : i32
    %20 = vector.broadcast %19 : i32 to vector<1x512xi32>
    %21 = arith.remsi %1, %20 : vector<1x512xi32>
    %c0_i32_6 = arith.constant 0 : i32
    %22 = vector.broadcast %c0_i32_6 : i32 to vector<1x512xi32>
    %23 = arith.cmpi ne, %21, %22 : vector<1x512xi32>
    %c0_i32_7 = arith.constant 0 : i32
    %24 = vector.broadcast %c0_i32_7 : i32 to vector<1x512xi32>
    %25 = arith.cmpi slt, %21, %24 : vector<1x512xi32>
    %c0_i32_8 = arith.constant 0 : i32
    %26 = arith.cmpi slt, %19, %c0_i32_8 : i32
    %27 = vector.broadcast %26 : i1 to vector<1x512xi1>
    %28 = vector.broadcast %27 : vector<1x512xi1> to vector<1x512xi1>
    %29 = arith.xori %25, %28 : vector<1x512xi1>
    %30 = arith.andi %29, %23 : vector<1x512xi1>
    %31 = vector.broadcast %19 : i32 to vector<1x512xi32>
    %32 = arith.addi %21, %31 : vector<1x512xi32>
    %33 = arith.select %30, %32, %21 : vector<1x512xi1>, vector<1x512xi32>
    %c16_i32_9 = arith.constant 16 : i32
    %34 = vector.broadcast %c16_i32_9 : i32 to vector<1x512xi32>
    %35 = arith.cmpi sge, %17, %34 : vector<1x512xi32>
    %c240_i32 = arith.constant 240 : i32
    %36 = vector.broadcast %c240_i32 : i32 to vector<1x512xi32>
    %37 = arith.cmpi slt, %17, %36 : vector<1x512xi32>
    %c1_i32_10 = arith.constant 1 : i32
    %38 = vector.broadcast %c1_i32_10 : i32 to vector<1x512xi32>
    %39 = arith.cmpi sge, %33, %38 : vector<1x512xi32>
    %c15_i32 = arith.constant 15 : i32
    %40 = vector.broadcast %c15_i32 : i32 to vector<1x512xi32>
    %41 = arith.cmpi slt, %33, %40 : vector<1x512xi32>
    %c0_11 = arith.constant 0 : index
    %c0_12 = arith.constant 0 : index
    %42 = vector.load %arg2[%c0_11, %c0_12] : memref<8x58xf32, #tpu.memory_space<vmem>>, vector<8x5xf32>
    %cst = arith.constant dense<0.000000e+00> : vector<8x512xf32>
    %43 = tpu.matmul %42, %0, %cst {dimension_numbers = #tpu.dot_dimension_numbers<[1], [0], [0], [1], [0, 0, 1, 1], [], []>} : vector<8x5xf32>, vector<5x512xf32>, vector<8x512xf32> -> vector<8x512xf32>
    %cst_13 = arith.constant 0.000000e+00 : f32
    %44 = vector.broadcast %cst_13 : f32 to vector<8x512xf32>
    %45 = arith.maximumf %43, %44 : vector<8x512xf32>
    %c16_i32_14 = arith.constant 16 : i32
    %46 = tpu.dynamic_rotate %45 by %c16_i32_14 dim 1 : vector<8x512xf32>, i32 -> vector<8x512xf32>
    %cst_15 = arith.constant 0.000000e+00 : f32
    %47 = vector.shape_cast %35 : vector<1x512xi1> to vector<1x512xi1>
    %48 = vector.broadcast %47 : vector<1x512xi1> to vector<8x512xi1>
    %49 = vector.broadcast %cst_15 : f32 to vector<8x512xf32>
    %50 = arith.select %48, %46, %49 : vector<8x512xi1>, vector<8x512xf32>
    %c496_i32 = arith.constant 496 : i32
    %51 = tpu.dynamic_rotate %45 by %c496_i32 dim 1 : vector<8x512xf32>, i32 -> vector<8x512xf32>
    %cst_16 = arith.constant 0.000000e+00 : f32
    %52 = vector.shape_cast %37 : vector<1x512xi1> to vector<1x512xi1>
    %53 = vector.broadcast %52 : vector<1x512xi1> to vector<8x512xi1>
    %54 = vector.broadcast %cst_16 : f32 to vector<8x512xf32>
    %55 = arith.select %53, %51, %54 : vector<8x512xi1>, vector<8x512xf32>
    %c0_17 = arith.constant 0 : index
    %c8 = arith.constant 8 : index
    %56 = vector.load %arg2[%c0_17, %c8] : memref<8x58xf32, #tpu.memory_space<vmem>>, vector<8x8xf32>
    %cst_18 = arith.constant dense<0.000000e+00> : vector<8x512xf32>
    %57 = tpu.matmul %56, %50, %cst_18 {dimension_numbers = #tpu.dot_dimension_numbers<[1], [0], [0], [1], [0, 0, 1, 1], [], []>} : vector<8x8xf32>, vector<8x512xf32>, vector<8x512xf32> -> vector<8x512xf32>
    %c0_19 = arith.constant 0 : index
    %c16 = arith.constant 16 : index
    %58 = vector.load %arg2[%c0_19, %c16] : memref<8x58xf32, #tpu.memory_space<vmem>>, vector<8x8xf32>
    %cst_20 = arith.constant dense<0.000000e+00> : vector<8x512xf32>
    %59 = tpu.matmul %58, %45, %cst_20 {dimension_numbers = #tpu.dot_dimension_numbers<[1], [0], [0], [1], [0, 0, 1, 1], [], []>} : vector<8x8xf32>, vector<8x512xf32>, vector<8x512xf32> -> vector<8x512xf32>
    %60 = arith.addf %57, %59 : vector<8x512xf32>
    %c0_21 = arith.constant 0 : index
    %c24 = arith.constant 24 : index
    %61 = vector.load %arg2[%c0_21, %c24] : memref<8x58xf32, #tpu.memory_space<vmem>>, vector<8x8xf32>
    %cst_22 = arith.constant dense<0.000000e+00> : vector<8x512xf32>
    %62 = tpu.matmul %61, %55, %cst_22 {dimension_numbers = #tpu.dot_dimension_numbers<[1], [0], [0], [1], [0, 0, 1, 1], [], []>} : vector<8x8xf32>, vector<8x512xf32>, vector<8x512xf32> -> vector<8x512xf32>
    %63 = arith.addf %60, %62 : vector<8x512xf32>
    %c0_23 = arith.constant 0 : index
    %c56 = arith.constant 56 : index
    %64 = vector.load %arg2[%c0_23, %c56] : memref<8x58xf32, #tpu.memory_space<vmem>>, vector<8x1xf32>
    %65 = vector.broadcast %64 : vector<8x1xf32> to vector<8x512xf32>
    %66 = arith.addf %63, %65 : vector<8x512xf32>
    %cst_24 = arith.constant 0.000000e+00 : f32
    %67 = vector.broadcast %cst_24 : f32 to vector<8x512xf32>
    %68 = arith.maximumf %66, %67 : vector<8x512xf32>
    %c1_i32_25 = arith.constant 1 : i32
    %69 = tpu.dynamic_rotate %68 by %c1_i32_25 dim 1 : vector<8x512xf32>, i32 -> vector<8x512xf32>
    %cst_26 = arith.constant 0.000000e+00 : f32
    %70 = vector.shape_cast %39 : vector<1x512xi1> to vector<1x512xi1>
    %71 = vector.broadcast %70 : vector<1x512xi1> to vector<8x512xi1>
    %72 = vector.broadcast %cst_26 : f32 to vector<8x512xf32>
    %73 = arith.select %71, %69, %72 : vector<8x512xi1>, vector<8x512xf32>
    %c511_i32 = arith.constant 511 : i32
    %74 = tpu.dynamic_rotate %68 by %c511_i32 dim 1 : vector<8x512xf32>, i32 -> vector<8x512xf32>
    %cst_27 = arith.constant 0.000000e+00 : f32
    %75 = vector.shape_cast %41 : vector<1x512xi1> to vector<1x512xi1>
    %76 = vector.broadcast %75 : vector<1x512xi1> to vector<8x512xi1>
    %77 = vector.broadcast %cst_27 : f32 to vector<8x512xf32>
    %78 = arith.select %76, %74, %77 : vector<8x512xi1>, vector<8x512xf32>
    %c0_28 = arith.constant 0 : index
    %c32 = arith.constant 32 : index
    %79 = vector.load %arg2[%c0_28, %c32] : memref<8x58xf32, #tpu.memory_space<vmem>>, vector<8x8xf32>
    %cst_29 = arith.constant dense<0.000000e+00> : vector<8x512xf32>
    %80 = tpu.matmul %79, %73, %cst_29 {dimension_numbers = #tpu.dot_dimension_numbers<[1], [0], [0], [1], [0, 0, 1, 1], [], []>} : vector<8x8xf32>, vector<8x512xf32>, vector<8x512xf32> -> vector<8x512xf32>
    %c0_30 = arith.constant 0 : index
    %c40 = arith.constant 40 : index
    %81 = vector.load %arg2[%c0_30, %c40] : memref<8x58xf32, #tpu.memory_space<vmem>>, vector<8x8xf32>
    %cst_31 = arith.constant dense<0.000000e+00> : vector<8x512xf32>
    %82 = tpu.matmul %81, %68, %cst_31 {dimension_numbers = #tpu.dot_dimension_numbers<[1], [0], [0], [1], [0, 0, 1, 1], [], []>} : vector<8x8xf32>, vector<8x512xf32>, vector<8x512xf32> -> vector<8x512xf32>
    %83 = arith.addf %80, %82 : vector<8x512xf32>
    %c0_32 = arith.constant 0 : index
    %c48 = arith.constant 48 : index
    %84 = vector.load %arg2[%c0_32, %c48] : memref<8x58xf32, #tpu.memory_space<vmem>>, vector<8x8xf32>
    %cst_33 = arith.constant dense<0.000000e+00> : vector<8x512xf32>
    %85 = tpu.matmul %84, %78, %cst_33 {dimension_numbers = #tpu.dot_dimension_numbers<[1], [0], [0], [1], [0, 0, 1, 1], [], []>} : vector<8x8xf32>, vector<8x512xf32>, vector<8x512xf32> -> vector<8x512xf32>
    %86 = arith.addf %83, %85 : vector<8x512xf32>
    %c0_34 = arith.constant 0 : index
    %c57 = arith.constant 57 : index
    %87 = vector.load %arg2[%c0_34, %c57] : memref<8x58xf32, #tpu.memory_space<vmem>>, vector<8x1xf32>
    %88 = vector.broadcast %87 : vector<8x1xf32> to vector<8x512xf32>
    %89 = arith.addf %86, %88 : vector<8x512xf32>
    %cst_35 = arith.constant 0.000000e+00 : f32
    %90 = vector.broadcast %cst_35 : f32 to vector<8x512xf32>
    %91 = arith.maximumf %89, %90 : vector<8x512xf32>
    %c0_36 = arith.constant 0 : index
    %c0_37 = arith.constant 0 : index
    %92 = vector.load %arg3[%c0_36, %c0_37] : memref<32x9xf32, #tpu.memory_space<vmem>>, vector<32x8xf32>
    %cst_38 = arith.constant dense<0.000000e+00> : vector<32x512xf32>
    %93 = tpu.matmul %92, %91, %cst_38 {dimension_numbers = #tpu.dot_dimension_numbers<[1], [0], [0], [1], [0, 0, 1, 1], [], []>} : vector<32x8xf32>, vector<8x512xf32>, vector<32x512xf32> -> vector<32x512xf32>
    %c0_39 = arith.constant 0 : index
    %c8_40 = arith.constant 8 : index
    %94 = vector.load %arg3[%c0_39, %c8_40] : memref<32x9xf32, #tpu.memory_space<vmem>>, vector<32x1xf32>
    %95 = vector.broadcast %94 : vector<32x1xf32> to vector<32x512xf32>
    %96 = arith.addf %93, %95 : vector<32x512xf32>
    %c0_41 = arith.constant 0 : index
    %c0_42 = arith.constant 0 : index
    %97 = vector.load %arg4[%c0_41, %c0_42] : memref<32x512xf32, #tpu.memory_space<vmem>>, vector<32x512xf32>
    tpu.vector_store %arg4[%c0_41, %c0_42], %96 {strides = array<i32>} : memref<32x512xf32, #tpu.memory_space<vmem>>, vector<32x512xf32>,
    return
  }
  func.func @transform_0(%arg0: i32) -> (i32, i32) {
    %c0_i32 = arith.constant 0 : i32
    %c0_i32_0 = arith.constant 0 : i32
    %c0_i32_1 = arith.constant 0 : i32
    return %c0_i32, %c0_i32_0 : i32, i32
  }
  func.func @transform_1(%arg0: i32) -> (i32, i32) {
    %c0_i32 = arith.constant 0 : i32
    %c0_i32_0 = arith.constant 0 : i32
    %c0_i32_1 = arith.constant 0 : i32
    return %c0_i32, %c0_i32_0 : i32, i32
  }
  func.func @transform_2(%arg0: i32) -> (i32, i32) {
    %c0_i32 = arith.constant 0 : i32
    %c0_i32_0 = arith.constant 0 : i32
    %c0_i32_1 = arith.constant 0 : i32
    return %c0_i32, %c0_i32_0 : i32, i32
  }
  func.func @transform_3(%arg0: i32) -> (i32, i32) {
    %c0_i32 = arith.constant 0 : i32
    %c0_i32_0 = arith.constant 0 : i32
    %c0_i32_1 = arith.constant 0 : i32
    return %c0_i32, %c0_i32_0 : i32, i32
  }
}

</mosaic_0001>

<bundles_post_ra>
// kernel: small_basic_block_forward.1
= control target key start
LH: loop header
LB: loop body
LE: loop exit
PB: predicated region body
PF: predicated region fallthrough
CT: control target
= control target key end

     0   :  { %vm140_vm0 = vcmask 1044480   ;;  %vm136_vm1 = vcmask 39936   ;;  %s1120_s22 = smov 120   ;;  %s1122_s23 = smov 104   ;;  %vm289_vm2 = vcmask 64512   ;;  %v18_v15 = vlaneseq  ;;  %s1335_s0 = inlined_call_operand.vmem [shape: f32[5,512], index: 0, kind: input, shape index: {}]   ;;  %s1336_s1 = inlined_call_operand.vmem [shape: f32[8,58], index: 1, kind: input, shape index: {}]   ;;  %s1337_s2 = inlined_call_operand.vmem [shape: f32[32,9], index: 2, kind: input, shape index: {}]   ;;  %s1338_s3 = inlined_call_operand.vmem [shape: f32[32,512], index: 3, kind: output, shape index: {}]  }
   0x1   :  { %v15_v0 = vld [vmem:[%s1335_s0 + $0x8] sm:$0x1f]  ;;  %v16_v1 = vld [vmem:[%s1335_s0 + $0x10] sm:$0x1f]  ;;  %v1160_v2 = vld [vmem:[%s1336_s1] sm:$0xff]  ;;  %s1119_s1 = smov 112  }
   0x2   :  { %1044 = vmatpush.msk.msra.mxu1 %vm140_vm0, %v15_v0  ;;  %1046 = vmatpush.msk.msra.mxu2 %vm140_vm0, %v16_v1  ;;  %v14_v3 = vld [vmem:[%s1335_s0] sm:$0x1f]  ;;  %v17_v4 = vld [vmem:[%s1335_s0 + $0x18] sm:$0x1f]  ;;  %s1121_s0 = smov 16   ;;  %v1179_v16 = vand.u32 127, %v18_v15 }
   0x3   :  { %1045 = vmatmul.msk.f32.vlgmr.msra.gmra.mxu1 %vm136_vm1, %v1160_v2  ;;  %1047 = vmatmul.msk.f32.vlgmr.msra.gmra.mxu2 %vm136_vm1, %v1160_v2  ;;  %v1123_v22 = vmov 56   ;;  %s1124_s24 = smov 88   ;;  %s1125_s25 = smov 96  }
   0x4   :  { %1042 = vmatpush.msk.msra.mxu0 %vm140_vm0, %v14_v3  ;;  %1048 = vmatpush.msk.msra.mxu3 %vm140_vm0, %v17_v4  ;;  %v1182_v17 = vadd.s32 256, %v1179_v16  ;;  %vm245_vm3 = vcmp.lt.s32.totalorder %v1179_v16, 16  ;;  %v1193_v25 = vadd.s32 384, %v1179_v16  ;;  %v27_v26 = vand.u32 255, %v1179_v16  ;;  %s1126_s26 = smov 1   ;;  %s1127_s27 = smov 127  }
   0x5   :  { %1043 = vmatmul.msk.f32.vlgmr.msra.gmra.mxu0 %vm136_vm1, %v1160_v2  ;;  %1049 = vmatmul.msk.f32.vlgmr.msra.gmra.mxu3 %vm136_vm1, %v1160_v2  ;;  %vm270_vm6 = vcmp.lt.s32.totalorder %v1179_v16, 112  ;;  %v1208_v34 = vadd.s32 128, %v1179_v16  ;;  %s1128_s28 = smov 80   ;;  %vm564_vm9 = vcmp.lt.s32.totalorder %v1179_v16, 1  ;;  %vm589_vm12 = vcmp.lt.s32.totalorder %v1179_v16, 127 }
   0x6   :  { %287 = vrot.lane.b32.xlu0 %v1160_v2, %s1119_s1  ;;  %372 = vrot.lane.b32.xlu2 %v1160_v2, %s1120_s22  ;;  %v41_v21 = vand.u32 255, %v1182_v17  ;;  %v48_v27 = vand.u32 255, %v1193_v25  ;;  %vm119_vm5 = vcmp.ge.s32.totalorder %v27_v26, 16 }
   0x7   :  { %1114 = vset.pattern.permute.xlu2 %v1123_v22  ;;  %v34_v38 = vand.u32 255, %v1208_v34 }
   0x8   :  { %vm121_vm4 = vcmp.ge.s32.totalorder %v41_v21, 16  ;;  %vm126_vm7 = vcmp.lt.s32.totalorder %v48_v27, 240 }
   0x9   :  { %vm124_vm8 = vcmp.lt.s32.totalorder %v34_v38, 240  ;;  %v875_v38 = vld [vmem:[%s1337_s2 + $0x8] sm:$0xff] }
  0x60   :  { %v373_v14 = vpop.permute.xlu2 %372 }
  0x78   :  { %v288_v13 = vpop.permute.xlu0 %287 }
  0x80   :  { %v190_v5 = vpop.f32.mrf.mxu1 }
  0x81   :  { %v234_v6 = vmax.f32 %v190_v5, 0.0 }
  0x82   :  { %v170_v7 = vpop.f32.mrf.mxu0 }
  0x83   :  { %239 = vrot.lane.b32.xlu0 %v234_v6, %s1121_s0  ;;  %v233_v8 = vmax.f32 %v170_v7, 0.0  ;;  %327 = vmatpush.msrb.mxu1 %v234_v6 }
  0x84   :  { %1051 = vmatmul.msk.f32.vlgmr.msrb.gmra.mxu1 %vm289_vm2, %v288_v13 }
  0x85   :  { %237 = vrot.lane.b32.xlu2 %v233_v8, %s1121_s0  ;;  %307 = vmatpush.msrb.mxu0 %v233_v8 }
  0x86   :  { %v210_v9 = vpop.f32.mrf.mxu2  ;;  %1050 = vmatmul.msk.f32.vlgmr.msrb.gmra.mxu0 %vm289_vm2, %v288_v13 }
  0x87   :  { %v235_v10 = vmax.f32 %v210_v9, 0.0 }
  0x88   :  { %v230_v11 = vpop.f32.mrf.mxu3 }
  0x89   :  { %241 = vrot.lane.b32.xlu1 %v235_v10, %s1121_s0  ;;  %347 = vmatpush.msrb.mxu2 %v235_v10  ;;  %v236_v12 = vmax.f32 %v230_v11, 0.0  ;;  %v96_v11 = vand.u32 15, %v1193_v25  ;;  %v82_v25 = vand.u32 15, %v1208_v34 }
  0x8a   :  { %1052 = vmatmul.msk.f32.vlgmr.msrb.gmra.mxu2 %vm289_vm2, %v288_v13 }
  0x8b   :  { %262 = vrot.lane.b32.xlu0 %v233_v8, %s1119_s1  ;;  %367 = vmatpush.msrb.mxu3 %v236_v12  ;;  %vm130_vm10 = vcmp.ge.s32.totalorder %v96_v11, 1  ;;  %vm134_vm14 = vcmp.lt.s32.totalorder %v96_v11, 15  ;;  %vm128_vm0 = vcmp.ge.s32.totalorder %v82_v25, 1 }
  0x8c   :  { %1053 = vmatmul.msk.f32.vlgmr.msrb.gmra.mxu3 %vm289_vm2, %v288_v13  ;;  %v89_v13 = vand.u32 15, %v1182_v17 }
  0x8d   :  { %268 = vrot.lane.b32.xlu2 %v236_v12, %s1119_s1 }
  0x8e   :  { %vm129_vm11 = vcmp.ge.s32.totalorder %v89_v13, 1  ;;  %vm133_vm13 = vcmp.lt.s32.totalorder %v89_v13, 15 }
  0x91   :  { %243 = vrot.lane.b32.xlu1 %v236_v12, %s1121_s0  ;;  %v1129_v12 = vmov 57  }
  0x93   :  { %456 = vrot.lane.b32.xlu0 %v1160_v2, %s1122_s23 }
  0x95   :  { %545 = vperm.xlu2 %1114, %v1160_v2  }
  0x99   :  { %266 = vrot.lane.b32.xlu1 %v235_v10, %s1119_s1 }
  0x9b   :  { %606 = vrot.lane.b32.xlu0 %v1160_v2, %s1124_s24 }
  0x9d   :  { %1115 = vset.pattern.permute.xlu2 %v1129_v12 }
  0xa1   :  { %264 = vrot.lane.b32.xlu1 %v234_v6, %s1119_s1 }
  0xa9   :  { %690 = vrot.lane.b32.xlu1 %v1160_v2, %s1125_s25 }
  0xdf   :  { %v238_v18 = vpop.permute.xlu2 %237 }
  0xe7   :  { %v269_v32 = vpop.permute.xlu2 %268 }
  0xef   :  { %v546_v52 = vpop.permute.xlu2 %545 }
  0xf5   :  { %v240_v19 = vpop.permute.xlu0 %239 }
  0xf6   :  { %v248_v20 = vsel %vm245_vm3, %v238_v18, %v240_v19 }
  0xf7   :  { %411 = vmatpush.msra.mxu1 %v248_v20 }
  0xf8   :  { %1056 = vmatmul.msk.f32.vlgmr.msra.gmra.mxu1 %vm289_vm2, %v373_v14 }
  0xfb   :  { %v242_v23 = vpop.permute.xlu1 %241 }
  0xfc   :  { %v247_v24 = vsel %vm245_vm3, %v240_v19, %v242_v23 }
  0xfd   :  { %1057 = vmatpush.msk.msra.mxu2 %vm121_vm4, %v247_v24  ;;  %v263_v28 = vpop.permute.xlu0 %262  ;;  %v75_v24 = vand.u32 15, %v1179_v16  ;;  %v874_v16 = vld [vmem:[%s1337_s2] sm:$0xff] }
  0xfe   :  { %1058 = vmatmul.msk.f32.vlgmr.msra.gmra.mxu2 %vm289_vm2, %v373_v14  ;;  %v274_v33 = vsel %vm270_vm6, %v269_v32, %v263_v28 }
  0xff   :  { %vm127_vm15 = vcmp.ge.s32.totalorder %v75_v24, 1  ;;  %vm131_vm1 = vcmp.lt.s32.totalorder %v75_v24, 15 }
 0x101   :  { %v329_v43 = vpop.f32.mrf.mxu1 }
 0x103   :  { %v244_v29 = vpop.permute.xlu1 %243  ;;  %v309_v45 = vpop.f32.mrf.mxu0 }
 0x104   :  { %v246_v30 = vsel %vm245_vm3, %v242_v23, %v244_v29  ;;  %v249_v31 = vsel %vm245_vm3, %v244_v29, %v238_v18  ;;  %vm132_vm3 = vcmp.lt.s32.totalorder %v82_v25, 15 }
 0x105   :  { %1054 = vmatpush.msk.msra.mxu0 %vm119_vm5, %v249_v31  ;;  %451 = vmatpush.msra.mxu3 %v246_v30  ;;  %v457_v36 = vpop.permute.xlu0 %456 }
 0x106   :  { %1055 = vmatmul.msk.f32.vlgmr.msra.gmra.mxu0 %vm289_vm2, %v373_v14  ;;  %1059 = vmatmul.msk.f32.vlgmr.msra.gmra.mxu3 %vm289_vm2, %v373_v14 }
 0x107   :  { %1064 = vmatpush.msk.msrb.mxu3 %vm126_vm7, %v274_v33 }
 0x10b   :  { %v267_v35 = vpop.permute.xlu1 %266 }
 0x10c   :  { %v271_v37 = vsel %vm270_vm6, %v267_v35, %v269_v32 }
 0x10d   :  { %515 = vmatpush.msrb.mxu2 %v271_v37  ;;  %v349_v42 = vpop.f32.mrf.mxu2  ;;  %v607_v8 = vpop.permute.xlu0 %606 }
 0x10e   :  { %1063 = vmatmul.msk.f32.vlgmr.msrb.gmra.mxu2 %vm289_vm2, %v457_v36  ;;  %1065 = vmatmul.msk.f32.vlgmr.msrb.gmra.mxu3 %vm289_vm2, %v457_v36 }
 0x10f   :  { %v369_v44 = vpop.f32.mrf.mxu3 }
 0x113   :  { %v265_v39 = vpop.permute.xlu1 %264 }
 0x114   :  { %v272_v40 = vsel %vm270_vm6, %v265_v39, %v267_v35  ;;  %v273_v41 = vsel %vm270_vm6, %v263_v28, %v265_v39  ;;  %v1130_v39 = vmov 8  }
 0x115   :  { %475 = vmatpush.msrb.mxu0 %v273_v41  ;;  %1061 = vmatpush.msk.msrb.mxu1 %vm124_vm8, %v272_v40  ;;  %v876_v40 = vld [vmem:[%s1337_s2 + $0x10] sm:$0xff] }
 0x116   :  { %1060 = vmatmul.msk.f32.vlgmr.msrb.gmra.mxu0 %vm289_vm2, %v457_v36  ;;  %1062 = vmatmul.msk.f32.vlgmr.msrb.gmra.mxu1 %vm289_vm2, %v457_v36 }
 0x117   :  { %1116 = vset.pattern.permute.xlu0 %v1130_v39  ;;  %1117 = vset.pattern.permute.xlu1 %v1130_v39 }
 0x11b   :  { %v691_v10 = vpop.permute.xlu1 %690 }
 0x175   :  { %v413_v48 = vpop.f32.mrf.mxu1 }
 0x176   :  { %v414_v55 = vadd.f32 %v413_v48, %v329_v43 }
 0x181   :  { %v433_v46 = vpop.f32.mrf.mxu2 }
 0x182   :  { %v434_v50 = vadd.f32 %v433_v46, %v349_v42 }
 0x183   :  { %v393_v49 = vpop.f32.mrf.mxu0 }
 0x184   :  { %v394_v56 = vadd.f32 %v393_v49, %v309_v45 }
 0x189   :  { %v453_v47 = vpop.f32.mrf.mxu3 }
 0x18a   :  { %v454_v51 = vadd.f32 %v453_v47, %v369_v44 }
 0x191   :  { %v517_v53 = vpop.f32.mrf.mxu2  ;;  %v537_v54 = vpop.f32.mrf.mxu3 }
 0x192   :  { %v542_v57 = vadd.f32 %v517_v53, %v434_v50  ;;  %v543_v58 = vadd.f32 %v537_v54, %v454_v51  ;;  %v877_v50 = vld [vmem:[%s1337_s2 + $0x18] sm:$0xff] }
 0x193   :  { %v497_v59 = vpop.f32.mrf.mxu1  ;;  %v477_v60 = vpop.f32.mrf.mxu0 }
 0x194   :  { %v541_v61 = vadd.f32 %v497_v59, %v414_v55  ;;  %v540_v62 = vadd.f32 %v477_v60, %v394_v56  ;;  %v551_v63 = vadd.f32 %v546_v52, %v543_v58  ;;  %v550_v0 = vadd.f32 %v546_v52, %v542_v57 }
 0x196   :  { %v548_v1 = vadd.f32 %v546_v52, %v540_v62  ;;  %v555_v3 = vmax.f32 %v551_v63, 0.0  ;;  %v554_v4 = vmax.f32 %v550_v0, 0.0  ;;  %v549_v5 = vadd.f32 %v546_v52, %v541_v61 }
 0x198   :  { %v552_v6 = vmax.f32 %v548_v1, 0.0  ;;  %562 = vrot.lane.b32.xlu0 %v555_v3, %s1126_s26  ;;  %685 = vmatpush.msra.mxu3 %v555_v3  ;;  %v553_v7 = vmax.f32 %v549_v5, 0.0 }
 0x199   :  { %560 = vrot.lane.b32.xlu2 %v554_v4, %s1126_s26  ;;  %665 = vmatpush.msra.mxu2 %v554_v4 }
 0x19a   :  { %558 = vrot.lane.b32.xlu1 %v553_v7, %s1126_s26  ;;  %625 = vmatpush.msra.mxu0 %v552_v6 }
 0x19b   :  { %645 = vmatpush.msra.mxu1 %v553_v7  ;;  %1066 = vmatmul.msk.f32.vlgmr.msra.gmra.mxu0 %vm289_vm2, %v607_v8 }
 0x19c   :  { %1067 = vmatmul.msk.f32.vlgmr.msra.gmra.mxu1 %vm289_vm2, %v607_v8  ;;  %1068 = vmatmul.msk.f32.vlgmr.msra.gmra.mxu2 %vm289_vm2, %v607_v8 }
 0x19d   :  { %1069 = vmatmul.msk.f32.vlgmr.msra.gmra.mxu3 %vm289_vm2, %v607_v8 }
 0x1a0   :  { %585 = vrot.lane.b32.xlu0 %v554_v4, %s1127_s27 }
 0x1a1   :  { %581 = vrot.lane.b32.xlu2 %v552_v6, %s1127_s27 }
 0x1a2   :  { %587 = vrot.lane.b32.xlu1 %v555_v3, %s1127_s27 }
 0x1a8   :  { %556 = vrot.lane.b32.xlu0 %v552_v6, %s1126_s26 }
 0x1a9   :  { %774 = vrot.lane.b32.xlu2 %v1160_v2, %s1128_s28 }
 0x1aa   :  { %583 = vrot.lane.b32.xlu1 %v553_v7, %s1127_s27 }
 0x1b0   :  { %880 = vperm.xlu0 %1116, %v874_v16  }
 0x1b1   :  { %863 = vperm.xlu2 %1115, %v1160_v2  }
 0x1b2   :  { %885 = vperm.xlu1 %1117, %v875_v38  }
 0x1b9   :  { %1118 = vset.pattern.permute.xlu2 %v1130_v39 }
 0x1ba   :  { %890 = vperm.xlu2 %1118, %v876_v40   ;;  %895 = vperm.xlu1 %1117, %v877_v50  }
 0x1f3   :  { %v561_v9 = vpop.permute.xlu2 %560 }
 0x1fb   :  { %v582_v18 = vpop.permute.xlu2 %581 }
 0x203   :  { %v775_v21 = vpop.permute.xlu2 %774 }
 0x20a   :  { %v563_v14 = vpop.permute.xlu0 %562 }
 0x20b   :  { %v565_v15 = vsel %vm564_vm9, %v561_v9, %v563_v14  ;;  %v864_v41 = vpop.permute.xlu2 %863 }
 0x20c   :  { %1076 = vmatpush.msk.msrb.mxu3 %vm130_vm10, %v565_v15  ;;  %v559_v19 = vpop.permute.xlu1 %558 }
 0x20d   :  { %v566_v20 = vsel %vm564_vm9, %v559_v19, %v561_v9  ;;  %1077 = vmatmul.msk.f32.vlgmr.msrb.gmra.mxu3 %vm289_vm2, %v691_v10 }
 0x20e   :  { %1074 = vmatpush.msk.msrb.mxu2 %vm129_vm11, %v566_v20 }
 0x20f   :  { %1075 = vmatmul.msk.f32.vlgmr.msrb.gmra.mxu2 %vm289_vm2, %v691_v10 }
 0x212   :  { %v586_v2 = vpop.permute.xlu0 %585 }
 0x214   :  { %v588_v17 = vpop.permute.xlu1 %587 }
 0x215   :  { %v590_v22 = vsel %vm589_vm12, %v586_v2, %v588_v17  ;;  %v593_v23 = vsel %vm589_vm12, %v588_v17, %v582_v18  ;;  %v891_v17 = vpop.permute.xlu2 %890 }
 0x216   :  { %1082 = vmatpush.msk.msra.mxu2 %vm133_vm13, %v590_v22  ;;  %1084 = vmatpush.msk.msra.mxu3 %vm134_vm14, %v593_v23 }
 0x217   :  { %1083 = vmatmul.msk.f32.vlgmr.msra.gmra.mxu2 %vm289_vm2, %v775_v21  ;;  %1085 = vmatmul.msk.f32.vlgmr.msra.gmra.mxu3 %vm289_vm2, %v775_v21 }
 0x218   :  { %v627_v34 = vpop.f32.mrf.mxu0 }
 0x219   :  { %v647_v35 = vpop.f32.mrf.mxu1 }
 0x21a   :  { %v557_v26 = vpop.permute.xlu0 %556 }
 0x21b   :  { %v567_v27 = vsel %vm564_vm9, %v557_v26, %v559_v19  ;;  %v568_v28 = vsel %vm564_vm9, %v563_v14, %v557_v26 }
 0x21c   :  { %v584_v29 = vpop.permute.xlu1 %583  ;;  %1070 = vmatpush.msk.msrb.mxu0 %vm127_vm15, %v568_v28  ;;  %1072 = vmatpush.msk.msrb.mxu1 %vm128_vm0, %v567_v27 }
 0x21d   :  { %v591_v30 = vsel %vm589_vm12, %v584_v29, %v586_v2  ;;  %v592_v31 = vsel %vm589_vm12, %v582_v18, %v584_v29  ;;  %1071 = vmatmul.msk.f32.vlgmr.msrb.gmra.mxu0 %vm289_vm2, %v691_v10  ;;  %1073 = vmatmul.msk.f32.vlgmr.msrb.gmra.mxu1 %vm289_vm2, %v691_v10 }
 0x21e   :  { %1078 = vmatpush.msk.msra.mxu0 %vm131_vm1, %v592_v31  ;;  %1080 = vmatpush.msk.msra.mxu1 %vm132_vm3, %v591_v30 }
 0x21f   :  { %v667_v32 = vpop.f32.mrf.mxu2 }
 0x220   :  { %v687_v33 = vpop.f32.mrf.mxu3 }
 0x222   :  { %v881_v1 = vpop.permute.xlu0 %880 }
 0x224   :  { %v886_v11 = vpop.permute.xlu1 %885 }
 0x225   :  { %1079 = vmatmul.msk.f32.vlgmr.msra.gmra.mxu0 %vm289_vm2, %v775_v21  ;;  %1081 = vmatmul.msk.f32.vlgmr.msra.gmra.mxu1 %vm289_vm2, %v775_v21 }
 0x22c   :  { %v896_v29 = vpop.permute.xlu1 %895 }
 0x290   :  { %v771_v37 = vpop.f32.mrf.mxu3 }
 0x291   :  { %v772_v42 = vadd.f32 %v771_v37, %v687_v33 }
 0x292   :  { %v751_v36 = vpop.f32.mrf.mxu2 }
 0x293   :  { %v752_v43 = vadd.f32 %v751_v36, %v667_v32 }
 0x29a   :  { %v711_v44 = vpop.f32.mrf.mxu0  ;;  %v731_v45 = vpop.f32.mrf.mxu1 }
 0x29b   :  { %v835_v46 = vpop.f32.mrf.mxu2  ;;  %v855_v47 = vpop.f32.mrf.mxu3  ;;  %v712_v55 = vadd.f32 %v711_v44, %v627_v34  ;;  %v732_v56 = vadd.f32 %v731_v45, %v647_v35 }
 0x29c   :  { %v860_v48 = vadd.f32 %v835_v46, %v752_v43  ;;  %v861_v49 = vadd.f32 %v855_v47, %v772_v42 }
 0x29e   :  { %v868_v51 = vadd.f32 %v864_v41, %v860_v48  ;;  %v869_v52 = vadd.f32 %v864_v41, %v861_v49 }
 0x2a0   :  { %v872_v53 = vmax.f32 %v868_v51, 0.0  ;;  %v873_v54 = vmax.f32 %v869_v52, 0.0 }
 0x2a2   :  { %979 = vmatpush.msrb.mxu2 %v872_v53  ;;  %1008 = vmatpush.msrb.mxu3 %v873_v54  ;;  %v795_v57 = vpop.f32.mrf.mxu0  ;;  %v815_v58 = vpop.f32.mrf.mxu1 }
 0x2a3   :  { %v858_v59 = vadd.f32 %v795_v57, %v712_v55  ;;  %v859_v60 = vadd.f32 %v815_v58, %v732_v56  ;;  %1094 = vmatmul.msk.f32.vlgmr.msrb.gmra.mxu2 %vm289_vm2, %v874_v16  ;;  %1098 = vmatmul.msk.f32.vlgmr.msrb.gmra.mxu3 %vm289_vm2, %v874_v16 }
 0x2a5   :  { %v866_v61 = vadd.f32 %v864_v41, %v858_v59  ;;  %v867_v62 = vadd.f32 %v864_v41, %v859_v60 }
 0x2a7   :  { %v870_v63 = vmax.f32 %v866_v61, 0.0  ;;  %v871_v0 = vmax.f32 %v867_v62, 0.0 }
 0x2a9   :  { %921 = vmatpush.msrb.mxu0 %v870_v63  ;;  %950 = vmatpush.msrb.mxu1 %v871_v0 }
 0x2aa   :  { %1086 = vmatmul.msk.f32.vlgmr.msrb.gmra.mxu0 %vm289_vm2, %v874_v16  ;;  %1090 = vmatmul.msk.f32.vlgmr.msrb.gmra.mxu1 %vm289_vm2, %v874_v16 }
 0x2ab   :  { %1095 = vmatmul.msk.f32.gmra.mxu2 %vm289_vm2, %v875_v38  ;;  %1099 = vmatmul.msk.f32.gmra.mxu3 %vm289_vm2, %v875_v38 }
 0x2b2   :  { %1087 = vmatmul.msk.f32.gmra.mxu0 %vm289_vm2, %v875_v38  ;;  %1091 = vmatmul.msk.f32.gmra.mxu1 %vm289_vm2, %v875_v38 }
 0x2b3   :  { %1096 = vmatmul.msk.f32.gmra.mxu2 %vm289_vm2, %v876_v40  ;;  %1100 = vmatmul.msk.f32.gmra.mxu3 %vm289_vm2, %v876_v40 }
 0x2ba   :  { %1088 = vmatmul.msk.f32.gmra.mxu0 %vm289_vm2, %v876_v40  ;;  %1092 = vmatmul.msk.f32.gmra.mxu1 %vm289_vm2, %v876_v40 }
 0x2bb   :  { %1097 = vmatmul.msk.f32.gmra.mxu2 %vm289_vm2, %v877_v50  ;;  %1101 = vmatmul.msk.f32.gmra.mxu3 %vm289_vm2, %v877_v50 }
 0x2c2   :  { %1089 = vmatmul.msk.f32.gmra.mxu0 %vm289_vm2, %v877_v50  ;;  %1093 = vmatmul.msk.f32.gmra.mxu1 %vm289_vm2, %v877_v50 }
 0x326   :  { %v981_v3 = vpop.f32.mrf.mxu2  ;;  %v1010_v4 = vpop.f32.mrf.mxu3 }
 0x327   :  { %v923_v5 = vpop.f32.mrf.mxu0  ;;  %v952_v6 = vpop.f32.mrf.mxu1  ;;  %v982_v7 = vadd.f32 %v981_v3, %v881_v1  ;;  %v1011_v10 = vadd.f32 %v1010_v4, %v881_v1 }
 0x328   :  { %v924_v8 = vadd.f32 %v923_v5, %v881_v1  ;;  %v953_v9 = vadd.f32 %v952_v6, %v881_v1 }
 0x329   :  { %1024 = vst [vmem:[%s1338_s3 + $0x10] sm:$0xff] %v982_v7 }
 0x32a   :  { %1022 = vst [vmem:[%s1338_s3] sm:$0xff] %v924_v8 }
 0x32b   :  { %1023 = vst [vmem:[%s1338_s3 + $0x8] sm:$0xff] %v953_v9 }
 0x32c   :  { %1025 = vst [vmem:[%s1338_s3 + $0x18] sm:$0xff] %v1011_v10 }
 0x32e   :  { %v984_v12 = vpop.f32.mrf.mxu2  ;;  %v1013_v13 = vpop.f32.mrf.mxu3 }
 0x32f   :  { %v926_v14 = vpop.f32.mrf.mxu0  ;;  %v955_v15 = vpop.f32.mrf.mxu1  ;;  %v985_v18 = vadd.f32 %v984_v12, %v886_v11  ;;  %v1014_v2 = vadd.f32 %v1013_v13, %v886_v11 }
 0x330   :  { %v927_v19 = vadd.f32 %v926_v14, %v886_v11  ;;  %v956_v20 = vadd.f32 %v955_v15, %v886_v11 }
 0x331   :  { %1028 = vst [vmem:[%s1338_s3 + $0x30] sm:$0xff] %v985_v18 }
 0x332   :  { %1026 = vst [vmem:[%s1338_s3 + $0x20] sm:$0xff] %v927_v19 }
 0x333   :  { %1027 = vst [vmem:[%s1338_s3 + $0x28] sm:$0xff] %v956_v20 }
 0x334   :  { %1029 = vst [vmem:[%s1338_s3 + $0x38] sm:$0xff] %v1014_v2 }
 0x336   :  { %v987_v21 = vpop.f32.mrf.mxu2  ;;  %v1016_v22 = vpop.f32.mrf.mxu3 }
 0x337   :  { %v929_v23 = vpop.f32.mrf.mxu0  ;;  %v958_v24 = vpop.f32.mrf.mxu1  ;;  %v988_v25 = vadd.f32 %v987_v21, %v891_v17  ;;  %v1017_v28 = vadd.f32 %v1016_v22, %v891_v17 }
 0x338   :  { %v930_v26 = vadd.f32 %v929_v23, %v891_v17  ;;  %v959_v27 = vadd.f32 %v958_v24, %v891_v17 }
 0x339   :  { %1032 = vst [vmem:[%s1338_s3 + $0x50] sm:$0xff] %v988_v25 }
 0x33a   :  { %1030 = vst [vmem:[%s1338_s3 + $0x40] sm:$0xff] %v930_v26 }
 0x33b   :  { %1031 = vst [vmem:[%s1338_s3 + $0x48] sm:$0xff] %v959_v27 }
 0x33c   :  { %1033 = vst [vmem:[%s1338_s3 + $0x58] sm:$0xff] %v1017_v28 }
 0x33e   :  { %v990_v30 = vpop.f32.mrf.mxu2  ;;  %v1019_v31 = vpop.f32.mrf.mxu3 }
 0x33f   :  { %v991_v32 = vadd.f32 %v990_v30, %v896_v29  ;;  %v1020_v33 = vadd.f32 %v1019_v31, %v896_v29  ;;  %v932_v34 = vpop.f32.mrf.mxu0  ;;  %v961_v35 = vpop.f32.mrf.mxu1 }
 0x340   :  { %v933_v36 = vadd.f32 %v932_v34, %v896_v29  ;;  %v962_v37 = vadd.f32 %v961_v35, %v896_v29 }
 0x341   :  { %1036 = vst [vmem:[%s1338_s3 + $0x70] sm:$0xff] %v991_v32 }
 0x342   :  { %1037 = vst [vmem:[%s1338_s3 + $0x78] sm:$0xff] %v1020_v33 }
 0x343   :  { %1034 = vst [vmem:[%s1338_s3 + $0x60] sm:$0xff] %v933_v36 }
 0x344   :  { %1035 = vst [vmem:[%s1338_s3 + $0x68] sm:$0xff] %v962_v37 }

</bundles_post_ra>
